<compile_context>
chip_gen: v5e
topology: v5e:2x2
jax: 0.10.0
libtpu: 0.0.40
codegen_flags: <defaults>
</compile_context>

<pallas_src>
import jax
import jax.numpy as jnp
import numpy as np
from jax.experimental import pallas as pl
from jax.experimental.pallas import tpu as pltpu

_LANE = 128
_VMEM_LIMIT_BYTES = 48 * 1024 * 1024   # < v7x 64 MiB physical; raises v5e's 16 MiB scoped default


def _round_up(x, m):
    return ((x + m - 1) // m) * m


def _sublane(dtype):
    # second-minor tiling granule: 8 for 4-byte dtypes, 16 for bf16/fp16 packing
    return 8 * (4 // jnp.dtype(dtype).itemsize)


# --------------------------------------------------------------------------
# Single CommonLayer kernel
# --------------------------------------------------------------------------
def _linear_relu_kernel(x_ref, w_ref, b_ref, o_ref):
    # x_ref: (tm, tk)  activations (compute dtype)
    # w_ref: (tk, tn)  weight, pre-transposed to (ip, op) at init (compute dtype)
    # b_ref: (1, tn)   f32 bias (resident across M and K)
    # o_ref: (tm, tn)  f32 output tile; doubles as the K accumulator (its block
    #                  index does not depend on k, so it stays in VMEM across K)
    k = pl.program_id(2)
    part = jnp.dot(x_ref[...], w_ref[...], preferred_element_type=jnp.float32)

    @pl.when(k == 0)
    def _():
        o_ref[...] = part            # direct assign: no zero-fill + add

    @pl.when(k > 0)
    def _():
        o_ref[...] += part

    @pl.when(k == pl.num_programs(2) - 1)
    def _():
        o_ref[...] = jnp.maximum(o_ref[...] + b_ref[...], 0.0)   # act = ReLU


def prepare_common_layer(weight, bias, *, compute_dtype=jnp.bfloat16, tn=None, tk=None):
    """One-time parameter prep (amortized over all forward calls):
       transpose (op, ip) -> (ip, op), zero-pad to tile multiples, cast to the
       MXU compute dtype.  weight: (op_size, ip_size) torch nn.Linear layout."""
    cdt = jnp.dtype(compute_dtype)
    op, ip = weight.shape
    tn = tn if tn is not None else min(_round_up(op, _LANE), 512)
    tk = tk if tk is not None else min(_round_up(ip, _LANE),
                                       2048 if cdt.itemsize == 2 else 1024)
    assert tn % _LANE == 0 and tk % _LANE == 0, "tn/tk must be multiples of 128"
    Np = _round_up(op, tn)
    Kp = _round_up(ip, tk)
    w_t = jnp.transpose(weight)                                           # (ip, op)
    w_t = jnp.pad(w_t, ((0, Kp - ip), (0, Np - op))).astype(cdt)          # once, at init
    b_p = jnp.pad(bias.astype(jnp.float32), (0, Np - op)).reshape(1, Np)
    return dict(w=w_t, b=b_p, ip=ip, op=op, Kp=Kp, Np=Np, tn=tn, tk=tk,
                compute_dtype=cdt)


def common_layer_forward(params, x, *, tm=None):
    """ReLU(x @ W^T + b).  x: (B, ip_size) f32; returns (B, op_size) f32."""
    B, ip = x.shape
    assert ip == params["ip"], "input size mismatch"
    cdt = params["compute_dtype"]
    sub = _sublane(cdt)
    tm = tm if tm is not None else min(_round_up(B, sub), 512)
    assert tm % sub == 0, f"tm must be a multiple of {sub} for compute dtype {cdt}"

    Mp = _round_up(B, tm)
    Kp, Np = params["Kp"], params["Np"]
    tn, tk = params["tn"], params["tk"]

    xp = jnp.pad(x, ((0, Mp - B), (0, Kp - ip))).astype(cdt)   # small, per-call pad of x only
    grid = (Mp // tm, Np // tn, Kp // tk)
    isz = cdt.itemsize

    out = pl.pallas_call(
        _linear_relu_kernel,
        out_shape=jax.ShapeDtypeStruct((Mp, Np), jnp.float32),
        grid_spec=pltpu.PrefetchScalarGridSpec(
            num_scalar_prefetch=0,
            grid=grid,
            in_specs=[
                pl.BlockSpec((tm, tk), lambda i, j, k: (i, k)),    # x tile
                pl.BlockSpec((tk, tn), lambda i, j, k: (k, j)),    # W^T tile (ip, op)
                pl.BlockSpec((1, tn), lambda i, j, k: (0, j)),     # bias, M/K-resident
            ],
            out_specs=pl.BlockSpec((tm, tn), lambda i, j, k: (i, j)),
        ),
        compiler_params=pltpu.CompilerParams(
            dimension_semantics=("parallel", "parallel", "arbitrary"),
            vmem_limit_bytes=_VMEM_LIMIT_BYTES,
        ),
        cost_estimate=pl.CostEstimate(
            flops=2 * Mp * Np * Kp,
            transcendentals=0,
            # x is streamed once per N tile, W once per M tile (re-streaming).
            bytes_accessed=(Mp * Kp * (Np // tn) + Kp * Np * (Mp // tm)) * isz
                           + Np * 4 + Mp * Np * 4,
        ),
    )(xp, params["w"], params["b"])

    return out[:B, :params["op"]]


# --------------------------------------------------------------------------
# Fused gate ensemble: E identical CommonLayers in ONE pallas_call
# --------------------------------------------------------------------------
def _ensemble_linear_relu_kernel(x_ref, w_ref, b_ref, o_ref):
    k = pl.program_id(3)
    part = jnp.dot(x_ref[...], w_ref[...], preferred_element_type=jnp.float32)

    @pl.when(k == 0)
    def _():
        o_ref[...] = part

    @pl.when(k > 0)
    def _():
        o_ref[...] += part

    @pl.when(k == pl.num_programs(3) - 1)
    def _():
        o_ref[...] = jnp.maximum(o_ref[...] + b_ref[...], 0.0)


def prepare_gate_ensemble(weights, biases, *, compute_dtype=jnp.bfloat16, tn=None, tk=None):
    """weights: (E, op_size, ip_size), biases: (E, op_size).  One-time prep."""
    cdt = jnp.dtype(compute_dtype)
    E, op, ip = weights.shape
    tn = tn if tn is not None else min(_round_up(op, _LANE), 512)
    tk = tk if tk is not None else min(_round_up(ip, _LANE),
                                       2048 if cdt.itemsize == 2 else 1024)
    assert tn % _LANE == 0 and tk % _LANE == 0
    Np = _round_up(op, tn)
    Kp = _round_up(ip, tk)
    w_t = jnp.transpose(weights, (0, 2, 1))                               # (E, ip, op)
    w_t = jnp.pad(w_t, ((0, 0), (0, Kp - ip), (0, Np - op))).astype(cdt)
    b_p = jnp.pad(biases.astype(jnp.float32), ((0, 0), (0, Np - op))).reshape(E, 1, Np)
    return dict(w=w_t, b=b_p, E=E, ip=ip, op=op, Kp=Kp, Np=Np, tn=tn, tk=tk,
                compute_dtype=cdt)


def gate_ensemble_forward(params, x, *, tm=None):
    """Returns (E, B, op_size) f32 = ReLU(x @ W_e^T + b_e) for every member e,
    in a single pallas_call (leading parallel grid axis over E)."""
    B, ip = x.shape
    assert ip == params["ip"], "input size mismatch"
    cdt = params["compute_dtype"]
    sub = _sublane(cdt)
    tm = tm if tm is not None else min(_round_up(B, sub), 512)
    assert tm % sub == 0

    E = params["E"]
    Mp = _round_up(B, tm)
    Kp, Np = params["Kp"], params["Np"]
    tn, tk = params["tn"], params["tk"]
    xp = jnp.pad(x, ((0, Mp - B), (0, Kp - ip))).astype(cdt)
    grid = (E, Mp // tm, Np // tn, Kp // tk)
    isz = cdt.itemsize

    out = pl.pallas_call(
        _ensemble_linear_relu_kernel,
        out_shape=jax.ShapeDtypeStruct((E, Mp, Np), jnp.float32),
        grid_spec=pltpu.PrefetchScalarGridSpec(
            num_scalar_prefetch=0,
            grid=grid,
            in_specs=[
                pl.BlockSpec((tm, tk), lambda e, i, j, k: (i, k)),           # shared x
                pl.BlockSpec((None, tk, tn), lambda e, i, j, k: (e, k, j)),  # W_e^T (squeezed E)
                pl.BlockSpec((None, 1, tn), lambda e, i, j, k: (e, 0, j)),   # b_e
            ],
            out_specs=pl.BlockSpec((None, tm, tn), lambda e, i, j, k: (e, i, j)),
        ),
        compiler_params=pltpu.CompilerParams(
            dimension_semantics=("parallel", "parallel", "parallel", "arbitrary"),
            vmem_limit_bytes=_VMEM_LIMIT_BYTES,
        ),
        cost_estimate=pl.CostEstimate(
            flops=2 * E * Mp * Np * Kp,
            transcendentals=0,
            bytes_accessed=E * ((Mp * Kp * (Np // tn) + Kp * Np * (Mp // tm)) * isz
                                + Np * 4 + Mp * Np * 4),
        ),
    )(xp, params["w"], params["b"])

    return out[:, :B, :params["op"]]


# --------------------------------------------------------------------------
# Init / reference helpers
# --------------------------------------------------------------------------
def xavier_uniform(key, shape):
    # Matches torch.nn.init.xavier_uniform_: U(-a, a), a = sqrt(6/(fan_in+fan_out))
    fan_out, fan_in = shape[-2], shape[-1]
    a = float(np.sqrt(6.0 / (fan_in + fan_out)))
    return jax.random.uniform(key, shape, minval=-a, maxval=a, dtype=jnp.float32)


def _reference(x, weight, bias, compute_dtype):
    # Reference with operands rounded to the kernel's compute dtype (exact for f32).
    xc = np.asarray(jnp.asarray(x).astype(compute_dtype).astype(jnp.float32))
    wc = np.asarray(jnp.asarray(weight).astype(compute_dtype).astype(jnp.float32))
    bn = np.asarray(bias, dtype=np.float32)
    return np.maximum(xc @ wc.T + bn, 0.0)


if __name__ == "__main__":
    key = jax.random.PRNGKey(0)
    k_x, k_w, k_x2, k_w2, k_b2, k_we, k_be = jax.random.split(key, 7)

    # --- case 1: module-typical tiny shapes, f32 compute path ---
    batch, ip_size, op_size = 8, 32, 32
    x = jax.random.normal(k_x, (batch, ip_size), dtype=jnp.float32)
    weight = xavier_uniform(k_w, (op_size, ip_size))     # nn.Linear.weight layout
    bias = jnp.zeros((op_size,), dtype=jnp.float32)
    params = prepare_common_layer(weight, bias, compute_dtype=jnp.float32)
    out = jax.block_until_ready(common_layer_forward(params, x))
    np.testing.assert_allclose(np.asarray(out),
                               _reference(x, weight, bias, jnp.float32),
                               rtol=1e-4, atol=1e-4)

    # --- case 2: multi-tile grid (1x2x3), bf16 MXU operands, f32 accumulation ---
    b2, ip2, op2 = 16, 384, 160
    x2 = jax.random.normal(k_x2, (b2, ip2), dtype=jnp.float32)
    w2 = xavier_uniform(k_w2, (op2, ip2))
    bias2 = jax.random.normal(k_b2, (op2,), dtype=jnp.float32) * 0.1
    params2 = prepare_common_layer(w2, bias2, compute_dtype=jnp.bfloat16, tn=128, tk=128)
    out2 = jax.block_until_ready(common_layer_forward(params2, x2, tm=16))
    np.testing.assert_allclose(np.asarray(out2),
                               _reference(x2, w2, bias2, jnp.bfloat16),
                               rtol=5e-3, atol=5e-3)

    # --- case 3: fused gate ensemble (E layers, one pallas_call), bf16 ---
    E = 4
    we = xavier_uniform(k_we, (E, op_size, ip_size))
    be = jax.random.normal(k_be, (E, op_size), dtype=jnp.float32) * 0.1
    ens_params = prepare_gate_ensemble(we, be, compute_dtype=jnp.bfloat16)
    out_e = jax.block_until_ready(gate_ensemble_forward(ens_params, x))
    for e in range(E):
        np.testing.assert_allclose(np.asarray(out_e[e]),
                                   _reference(x, we[e], be[e], jnp.bfloat16),
                                   rtol=5e-3, atol=5e-3)

    print("KERNEL_OK")
</pallas_src>

<mosaic_0001>
module attributes {stable_mosaic.version = 11 : i64} {
  func.func @_linear_relu_kernel(%arg0: i32, %arg1: i32, %arg2: i32, %arg3: memref<8x128xf32, #tpu.memory_space<vmem>>, %arg4: memref<128x128xf32, #tpu.memory_space<vmem>>, %arg5: memref<1x128xf32, #tpu.memory_space<vmem>>, %arg6: memref<8x128xf32, #tpu.memory_space<vmem>>) attributes {dimension_semantics = [#tpu.dimension_semantics<parallel>, #tpu.dimension_semantics<parallel>, #tpu.dimension_semantics<arbitrary>], iteration_bounds = array<i64: 1, 1, 1>, scalar_prefetch = 0 : i64, scratch_operands = 0 : i64, tpu.core_type = #tpu.core_type<tc>, window_params = [{transform_indices = @transform_0, window_bounds = array<i64: 8, 128>}, {transform_indices = @transform_1, window_bounds = array<i64: 128, 128>}, {transform_indices = @transform_2, window_bounds = array<i64: 1, 128>}, {transform_indices = @transform_3, window_bounds = array<i64: 8, 128>}]} {
    %c0 = arith.constant 0 : index
    %c0_0 = arith.constant 0 : index
    %0 = vector.load %arg3[%c0, %c0_0] : memref<8x128xf32, #tpu.memory_space<vmem>>, vector<8x128xf32>
    %c0_1 = arith.constant 0 : index
    %c0_2 = arith.constant 0 : index
    %1 = vector.load %arg4[%c0_1, %c0_2] : memref<128x128xf32, #tpu.memory_space<vmem>>, vector<128x128xf32>
    %cst = arith.constant dense<0.000000e+00> : vector<8x128xf32>
    %2 = tpu.matmul %0, %1, %cst {dimension_numbers = #tpu.dot_dimension_numbers<[1], [0], [0], [1], [0, 0, 1, 1], [], []>} : vector<8x128xf32>, vector<128x128xf32>, vector<8x128xf32> -> vector<8x128xf32>
    %c0_i32 = arith.constant 0 : i32
    %3 = arith.cmpi eq, %arg2, %c0_i32 : i32
    %4 = arith.extui %3 : i1 to i32
    %c0_i32_3 = arith.constant 0 : i32
    %5 = arith.cmpi ne, %4, %c0_i32_3 : i32
    scf.if %5 {
      %c0_8 = arith.constant 0 : index
      %c0_9 = arith.constant 0 : index
      %12 = vector.load %arg6[%c0_8, %c0_9] : memref<8x128xf32, #tpu.memory_space<vmem>>, vector<8x128xf32>
      tpu.vector_store %arg6[%c0_8, %c0_9], %2 {strides = array<i32>} : memref<8x128xf32, #tpu.memory_space<vmem>>, vector<8x128xf32>,
    } else {
    }
    %c0_i32_4 = arith.constant 0 : i32
    %6 = arith.cmpi sgt, %arg2, %c0_i32_4 : i32
    %7 = arith.extui %6 : i1 to i32
    %c0_i32_5 = arith.constant 0 : i32
    %8 = arith.cmpi ne, %7, %c0_i32_5 : i32
    scf.if %8 {
      %c0_8 = arith.constant 0 : index
      %c0_9 = arith.constant 0 : index
      %12 = vector.load %arg6[%c0_8, %c0_9] : memref<8x128xf32, #tpu.memory_space<vmem>>, vector<8x128xf32>
      %13 = arith.addf %12, %2 : vector<8x128xf32>
      %c0_10 = arith.constant 0 : index
      %c0_11 = arith.constant 0 : index
      %14 = vector.load %arg6[%c0_10, %c0_11] : memref<8x128xf32, #tpu.memory_space<vmem>>, vector<8x128xf32>
      tpu.vector_store %arg6[%c0_10, %c0_11], %13 {strides = array<i32>} : memref<8x128xf32, #tpu.memory_space<vmem>>, vector<8x128xf32>,
    } else {
    }
    %c0_i32_6 = arith.constant 0 : i32
    %9 = arith.cmpi eq, %arg2, %c0_i32_6 : i32
    %10 = arith.extui %9 : i1 to i32
    %c0_i32_7 = arith.constant 0 : i32
    %11 = arith.cmpi ne, %10, %c0_i32_7 : i32
    scf.if %11 {
      %c0_8 = arith.constant 0 : index
      %c0_9 = arith.constant 0 : index
      %12 = vector.load %arg6[%c0_8, %c0_9] : memref<8x128xf32, #tpu.memory_space<vmem>>, vector<8x128xf32>
      %c0_10 = arith.constant 0 : index
      %c0_11 = arith.constant 0 : index
      %13 = vector.load %arg5[%c0_10, %c0_11] : memref<1x128xf32, #tpu.memory_space<vmem>>, vector<1x128xf32>
      %14 = vector.broadcast %13 : vector<1x128xf32> to vector<8x128xf32>
      %15 = arith.addf %12, %14 : vector<8x128xf32>
      %cst_12 = arith.constant 0.000000e+00 : f32
      %16 = vector.broadcast %cst_12 : f32 to vector<8x128xf32>
      %17 = arith.maximumf %15, %16 : vector<8x128xf32>
      %c0_13 = arith.constant 0 : index
      %c0_14 = arith.constant 0 : index
      %18 = vector.load %arg6[%c0_13, %c0_14] : memref<8x128xf32, #tpu.memory_space<vmem>>, vector<8x128xf32>
      tpu.vector_store %arg6[%c0_13, %c0_14], %17 {strides = array<i32>} : memref<8x128xf32, #tpu.memory_space<vmem>>, vector<8x128xf32>,
    } else {
    }
    return
  }
  func.func @transform_0(%arg0: i32, %arg1: i32, %arg2: i32) -> (i32, i32) {
    %c0_i32 = arith.constant 0 : i32
    return %arg0, %arg2 : i32, i32
  }
  func.func @transform_1(%arg0: i32, %arg1: i32, %arg2: i32) -> (i32, i32) {
    %c0_i32 = arith.constant 0 : i32
    return %arg2, %arg1 : i32, i32
  }
  func.func @transform_2(%arg0: i32, %arg1: i32, %arg2: i32) -> (i32, i32) {
    %c0_i32 = arith.constant 0 : i32
    %c0_i32_0 = arith.constant 0 : i32
    return %c0_i32, %arg1 : i32, i32
  }
  func.func @transform_3(%arg0: i32, %arg1: i32, %arg2: i32) -> (i32, i32) {
    %c0_i32 = arith.constant 0 : i32
    return %arg0, %arg1 : i32, i32
  }
}

</mosaic_0001>

<bundles_post_ra>
// kernel: tpu_custom_call.1
= control target key start
LH: loop header
LB: loop body
LE: loop exit
PB: predicated region body
PF: predicated region fallthrough
CT: control target
= control target key end

     0   :  { %8 = vsyncpa [#allocation3], 0  ;;  %s244_s0 = inlined_call_operand.hbm [shape: f32[8,128], index: 0, kind: input, shape index: {}]   ;;  %s245_s1 = inlined_call_operand.hbm [shape: f32[128,128], index: 1, kind: input, shape index: {}]   ;;  %s246_s2 = inlined_call_operand.vmem [shape: f32[1,128], index: 2, kind: input, shape index: {}]   ;;  %s247_s3 = inlined_call_operand.hbm [shape: f32[8,128], index: 3, kind: output, shape index: {}]  }
   0x1   :  { %9 = vsyncpa [#allocation6], 0 }
   0x2   :  { %10 = vsyncpa [#allocation4], 0  ;;  %s16_s14 = sshll.u32 %s244_s0, 4  ;;  %s207_s15 = smov [#allocation2]   ;;  %s17_s14 = int_to_ptr.hbm [resolvable:$true] %s16_s14 }
   0x3   :  { %s18_s16 = sshll.u32 %s207_s15, 4  ;;  %s26_s19 = sshll.u32 %s245_s1, 4  ;;  %s19_s16 = int_to_ptr.vmem [resolvable:$true] %s18_s16  ;;  %s27_s19 = int_to_ptr.hbm [resolvable:$true] %s26_s19 }
   0x4   :  { %21 = dma.hbm_to_vmem [thread:$0]  %s17_s14, 128, %s19_s16, [#allocation3]  }
   0x5   :  { %s208_s20 = smov [#allocation5]   ;;  %s209_s22 = smov 128  }
   0x6   :  { %s28_s21 = sshll.u32 %s208_s20, 4  ;;  %s210_s23 = smov 8   ;;  %s29_s21 = int_to_ptr.vmem [resolvable:$true] %s28_s21 }
   0x7   :  { %34 = dma.hbm_to_vmem [thread:$0]  %s27_s19, 2048, %s29_s21, [#allocation6], %s209_s22, %s209_s22, %s210_s23  }
   0x8   :  { %201 = dma.done.wait [#allocation3], 128  }
   0x9   :  { %202 = vsyncadd [#allocation3], 4294967168 }
   0xa   :  { %203 = dma.done.wait [#allocation6], 2048  }
   0xb   :  { %204 = vsyncadd [#allocation6], 4294965248  ;;  %v61_v0 = vld [vmem:[#allocation5 + $0x78] sm:$0xff]  ;;  %v60_v1 = vld [vmem:[#allocation5 + $0x70] sm:$0xff]  ;;  %s211_s24 = smov [#allocation7]   ;;  %s112_s28 = sshll.u32 %s247_s3, 4  ;;  %s113_s28 = int_to_ptr.hbm [resolvable:$true] %s112_s28 }
   0xc   :  { %62 = vmatpush.msra.mxu0 %v61_v0  ;;  %v59_v2 = vld [vmem:[#allocation5 + $0x68] sm:$0xff]  ;;  %v58_v3 = vld [vmem:[#allocation5 + $0x60] sm:$0xff]  ;;  %v57_v4 = vld [vmem:[#allocation5 + $0x58] sm:$0xff]  ;;  %s110_s25 = sshll.u32 %s211_s24, 4  ;;  %s111_s25 = int_to_ptr.vmem [resolvable:$true] %s110_s25 }
   0xd   :  { %v56_v5 = vld [vmem:[#allocation5 + $0x50] sm:$0xff]  ;;  %v55_v6 = vld [vmem:[#allocation5 + $0x48] sm:$0xff]  ;;  %v54_v7 = vld [vmem:[#allocation5 + $0x40] sm:$0xff] }
   0xe   :  { %63 = vmatpush.msra.mxu0 %v60_v1  ;;  %v53_v8 = vld [vmem:[#allocation5 + $0x38] sm:$0xff]  ;;  %v52_v9 = vld [vmem:[#allocation5 + $0x30] sm:$0xff]  ;;  %v51_v10 = vld [vmem:[#allocation5 + $0x28] sm:$0xff] }
   0xf   :  { %v50_v11 = vld [vmem:[#allocation5 + $0x20] sm:$0xff]  ;;  %v49_v12 = vld [vmem:[#allocation5 + $0x18] sm:$0xff]  ;;  %v48_v13 = vld [vmem:[#allocation5 + $0x10] sm:$0xff] }
  0x10   :  { %64 = vmatpush.msra.mxu0 %v59_v2  ;;  %v47_v14 = vld [vmem:[#allocation5 + $0x8] sm:$0xff]  ;;  %v46_v15 = vld [vmem:[#allocation5] sm:$0xff]  ;;  %v45_v16 = vld [vmem:[#allocation2] sm:$0xff] }
  0x11   :  { %v128_v17 = vld [vmem:[%s246_s2] ss:$0 sm:$0xff] }
  0x12   :  { %65 = vmatpush.msra.mxu0 %v58_v3 }
  0x14   :  { %66 = vmatpush.msra.mxu0 %v57_v4 }
  0x16   :  { %67 = vmatpush.msra.mxu0 %v56_v5 }
  0x18   :  { %68 = vmatpush.msra.mxu0 %v55_v6 }
  0x1a   :  { %69 = vmatpush.msra.mxu0 %v54_v7 }
  0x1c   :  { %70 = vmatpush.msra.mxu0 %v53_v8 }
  0x1e   :  { %71 = vmatpush.msra.mxu0 %v52_v9 }
  0x20   :  { %72 = vmatpush.msra.mxu0 %v51_v10 }
  0x22   :  { %73 = vmatpush.msra.mxu0 %v50_v11 }
  0x24   :  { %74 = vmatpush.msra.mxu0 %v49_v12 }
  0x26   :  { %75 = vmatpush.msra.mxu0 %v48_v13 }
  0x28   :  { %76 = vmatpush.msra.mxu0 %v47_v14 }
  0x2a   :  { %77 = vmatpush.msra.mxu0 %v46_v15 }
  0x2b   :  { %78 = vmatmul.f32.vlgmr.msra.gmra.mxu0 %v45_v16 }
  0xa8   :  { %v79_v18 = vpop.f32.mrf.mxu0 }
  0xa9   :  { %v102_v19 = vadd.f32 %v128_v17, %v79_v18 }
  0xab   :  { %v103_v20 = vmax.f32 %v102_v19, 0.0 }
  0xad   :  { %104 = vst [vmem:[#allocation7] sm:$0xff] %v103_v20 }
  0xae   :  { %115 = dma.vmem_to_hbm [thread:$0]  %s111_s25, 128, %s113_s28, [#allocation4]  }
  0xaf   :  { %205 = dma.done.wait [#allocation4], 128  }
  0xb0   :  { %206 = vsyncadd [#allocation4], 4294967168 }
  0xb1   :  { %120 = vsyncpa [#allocation3], 1 }
  0xb2   :  { %121 = vsyncpa [#allocation6], 1 }
  0xb3   :  { %122 = vsyncpa [#allocation4], 1 }

</bundles_post_ra>
